<compile_context>
chip_gen: v7x
topology: tpu7x:2x2x1
jax: 0.10.0
libtpu: 0.0.40
codegen_flags: <defaults>
</compile_context>

<pallas_src>
import jax
import jax.numpy as jnp
from jax import lax
from jax.experimental import pallas as pl
from jax.experimental.pallas import tpu as pltpu


# ----------------------------- matmul kernels -----------------------------

def _matmul_kernel(a_ref, b_ref, o_ref):
    o_ref[...] = jnp.dot(a_ref[...], b_ref[...],
                         preferred_element_type=jnp.float32).astype(o_ref.dtype)


def _matmul_bias_kernel(a_ref, b_ref, bias_ref, o_ref):
    acc = jnp.dot(a_ref[...], b_ref[...], preferred_element_type=jnp.float32)
    acc = acc + bias_ref[...]
    o_ref[...] = acc.astype(o_ref.dtype)


def _pick_m_tile(m, target=256):
    if m <= target:
        return m
    for t in range(target, 0, -1):
        if m % t == 0:
            return t
    return m


def pallas_matmul(a, b, bias=None, out_dtype=jnp.bfloat16):
    """(M,K) @ (K,N) [+ bias]; bf16 MXU inputs, f32 accumulation, M-tiled/parallel."""
    M, K = a.shape
    K2, N = b.shape
    assert K == K2
    tm = _pick_m_tile(M)
    grid = (M // tm,)
    a = a.astype(jnp.bfloat16)
    b = b.astype(jnp.bfloat16)
    a_spec = pl.BlockSpec((tm, K), lambda i: (i, 0))
    b_spec = pl.BlockSpec((K, N), lambda i: (0, 0))
    o_spec = pl.BlockSpec((tm, N), lambda i: (i, 0))
    cparams = pltpu.CompilerParams(dimension_semantics=("parallel",))
    if bias is None:  # biasless variant: no zero-bias DMA / add
        return pl.pallas_call(
            _matmul_kernel,
            out_shape=jax.ShapeDtypeStruct((M, N), out_dtype),
            grid=grid, in_specs=[a_spec, b_spec], out_specs=o_spec,
            compiler_params=cparams,
        )(a, b)
    bias2d = bias.reshape(1, N).astype(jnp.float32)
    return pl.pallas_call(
        _matmul_bias_kernel,
        out_shape=jax.ShapeDtypeStruct((M, N), out_dtype),
        grid=grid,
        in_specs=[a_spec, b_spec, pl.BlockSpec((1, N), lambda i: (0, 0))],
        out_specs=o_spec,
        compiler_params=cparams,
    )(a, b, bias2d)


# --------------------- grouped 3x3 conv (taps in VMEM) ---------------------

def _gelu_erf_f32(x):
    # exact-erf GELU via Abramowitz-Stegun 7.1.26 (|erf err| < 1.5e-7); exp -> EUP.
    z = x * jnp.float32(0.7071067811865476)
    az = jnp.abs(z)
    t = 1.0 / (1.0 + jnp.float32(0.3275911) * az)
    poly = t * (jnp.float32(0.254829592) + t * (jnp.float32(-0.284496736)
           + t * (jnp.float32(1.421413741) + t * (jnp.float32(-1.453152027)
           + t * jnp.float32(1.061405429)))))
    erf_abs = 1.0 - poly * jnp.exp(-az * az)
    erf = jnp.where(z >= 0, erf_abs, -erf_abs)
    return jnp.float32(0.5) * x * (1.0 + erf)


def _make_conv_kernel(H, W, Cin, Cout, apply_gelu):
    def kernel(x_ref, w_ref, o_ref):
        # x_ref: (1, H+2, W+2, Cin) padded NHWC block for one batch element
        # w_ref: (9, Cin, Cout)     block-diagonal expanded grouped-conv weights
        # o_ref: (1, H*W, Cout)
        acc = jnp.zeros((H * W, Cout), jnp.float32)
        for t in range(9):
            ky, kx = t // 3, t % 3
            tap = x_ref[0, ky:ky + H, kx:kx + W, :]      # (H, W, Cin) window load
            tap = tap.reshape(H * W, Cin)                # layout-preserving: W % 8 == 0
            acc = acc + jnp.dot(tap, w_ref[t], preferred_element_type=jnp.float32)
        if apply_gelu:
            acc = _gelu_erf_f32(acc)
        o_ref[0] = acc.astype(o_ref.dtype)
    return kernel


def pallas_conv3x3_grouped(x_nhwc, w_expanded, apply_gelu=False, out_dtype=jnp.bfloat16):
    """3x3 / pad=1 grouped conv; taps formed in VMEM from the padded block."""
    B, H, W, Cin = x_nhwc.shape
    Cout = w_expanded.shape[-1]
    # TODO(synk): generalize the in-kernel (H,W,C)->(H*W,C) reshape to W % 8 != 0.
    assert W % 8 == 0, "in-kernel tap reshape requires W to be a multiple of 8"
    xp = jnp.pad(x_nhwc.astype(jnp.bfloat16), ((0, 0), (1, 1), (1, 1), (0, 0)))
    return pl.pallas_call(
        _make_conv_kernel(H, W, Cin, Cout, apply_gelu),
        out_shape=jax.ShapeDtypeStruct((B, H * W, Cout), out_dtype),
        grid=(B,),
        in_specs=[pl.BlockSpec((1, H + 2, W + 2, Cin), lambda b: (b, 0, 0, 0)),
                  pl.BlockSpec((9, Cin, Cout), lambda b: (0, 0, 0))],
        out_specs=pl.BlockSpec((1, H * W, Cout), lambda b: (b, 0, 0)),
        compiler_params=pltpu.CompilerParams(dimension_semantics=("parallel",)),
    )(xp, w_expanded.astype(jnp.bfloat16))


# ----------------------- dual attention (heads batched) --------------------

def _attn_kernel(q_ref, k_ref, v_ref, q2_ref, k2_ref, r1_ref, r2_ref, o_ref):
    eps = jnp.float32(1e-12)

    def l2n(t):  # F.normalize(p=2, dim=-1), f32 math, rsqrt on the EUP
        ss = jnp.sum(t * t, axis=-1, keepdims=True)
        return t * lax.rsqrt(jnp.maximum(ss, eps * eps))

    def smax(t):  # softmax over last dim, f32 math, approx reciprocal on the EUP
        m = jnp.max(t, axis=-1, keepdims=True)
        e = jnp.exp(t - m)
        return e * pl.reciprocal(jnp.sum(e, axis=-1, keepdims=True), approx=True)

    q = l2n(q_ref[0].astype(jnp.float32)).astype(jnp.bfloat16)     # (h, d, n)
    k = l2n(k_ref[0].astype(jnp.float32)).astype(jnp.bfloat16)
    q2 = l2n(q2_ref[0].astype(jnp.float32)).astype(jnp.bfloat16)
    k2 = l2n(k2_ref[0].astype(jnp.float32)).astype(jnp.bfloat16)
    v = v_ref[0]                                                   # (h, d, n) bf16

    a1 = jnp.einsum('hdn,hen->hde', q, k, preferred_element_type=jnp.float32)
    a1 = smax(a1 * r1_ref[...])
    a2 = jnp.einsum('hdn,hen->hde', q2, k2, preferred_element_type=jnp.float32)
    a2 = smax(a2 * r2_ref[...])
    a3 = smax(a1 * a2).astype(jnp.bfloat16)
    x = jnp.einsum('hde,hen->hdn', a3, v, preferred_element_type=jnp.float32)
    o_ref[0] = x.astype(o_ref.dtype)                               # lane-dense (n=HW)


def pallas_dual_attention(q, k, v, q2, k2, rescale, rescale2):
    B, H, D, N = q.shape
    assert q2.shape == (B, H, D, N) and k2.shape == (B, H, D, N)
    spec4 = pl.BlockSpec((1, H, D, N), lambda b: (b, 0, 0, 0))
    rspec = pl.BlockSpec((H, D, D), lambda b: (0, 0, 0))
    r1 = jnp.broadcast_to(rescale.reshape(H, 1, 1).astype(jnp.float32), (H, D, D))
    r2 = jnp.broadcast_to(rescale2.reshape(H, 1, 1).astype(jnp.float32), (H, D, D))
    bf = lambda t: t.astype(jnp.bfloat16)
    return pl.pallas_call(
        _attn_kernel,
        out_shape=jax.ShapeDtypeStruct((B, H, D, N), jnp.bfloat16),
        grid=(B,),
        in_specs=[spec4, spec4, spec4, spec4, spec4, rspec, rspec],
        out_specs=spec4,
        compiler_params=pltpu.CompilerParams(dimension_semantics=("parallel",)),
    )(bf(q), bf(k), bf(v), bf(q2), bf(k2), r1, r2)


# ------------------------------ parameters --------------------------------

def expand_grouped_weight(w_oihw, groups):
    """PyTorch grouped 3x3 conv weight (Cout, Cin/groups, 3, 3) ->
    per-tap block-diagonal matmul weight (9, Cin, Cout)."""
    Cout, Cin_g, KH, KW = w_oihw.shape
    Cout_g = Cout // groups
    Cin = Cin_g * groups
    E = jnp.zeros((KH * KW, Cin, Cout), jnp.float32)
    for g in range(groups):
        wg = w_oihw[g * Cout_g:(g + 1) * Cout_g]                     # (Cout_g, Cin_g, 3, 3)
        blk = jnp.transpose(wg, (2, 3, 1, 0)).reshape(KH * KW, Cin_g, Cout_g)
        E = E.at[:, g * Cin_g:(g + 1) * Cin_g, g * Cout_g:(g + 1) * Cout_g].set(blk)
    return E


def init_params(key, dim, dim_head, heads):
    hd = dim_head * heads
    ks = jax.random.split(key, 11)
    s = 0.1
    p = {}
    p['Wq'] = s * jax.random.normal(ks[0], (dim, hd), jnp.float32)        # to_q (x @ W)
    p['Wk'] = s * jax.random.normal(ks[1], (dim, hd), jnp.float32)
    p['Wv'] = s * jax.random.normal(ks[2], (dim, hd), jnp.float32)
    p['Wq1'] = s * jax.random.normal(ks[3], (dim, 4 * dim), jnp.float32)  # 1x1 conv (x @ W)
    p['Wk1'] = s * jax.random.normal(ks[4], (dim, 4 * dim), jnp.float32)
    p['Wqc'] = s * jax.random.normal(ks[5], (4 * dim, 4 * dim // dim, 3, 3), jnp.float32)
    p['Wkc'] = s * jax.random.normal(ks[6], (4 * dim, 4 * dim // dim, 3, 3), jnp.float32)
    p['Wp'] = s * jax.random.normal(ks[7], (hd, dim), jnp.float32)        # proj (x @ W)
    p['bp'] = s * jax.random.normal(ks[8], (dim,), jnp.float32)
    p['Wpe1'] = s * jax.random.normal(ks[9], (dim, hd // dim, 3, 3), jnp.float32)
    p['Wpe2'] = s * jax.random.normal(ks[10], (dim, 1, 3, 3), jnp.float32)
    p['rescale'] = jnp.ones((heads,), jnp.float32)
    p['rescale2'] = jnp.ones((heads,), jnp.float32)
    # temperature parameter exists in the module but is unused in forward.
    # bf16 fused / expanded weights for the kernels (masters kept in f32 above)
    p['W_fused'] = jnp.concatenate(
        [p['Wq'], p['Wk'], p['Wv'], p['Wq1'], p['Wk1']], axis=1).astype(jnp.bfloat16)
    p['Eqc_bf16'] = expand_grouped_weight(p['Wqc'], dim).astype(jnp.bfloat16)
    p['Ekc_bf16'] = expand_grouped_weight(p['Wkc'], dim).astype(jnp.bfloat16)
    p['Epe1_bf16'] = expand_grouped_weight(p['Wpe1'], dim).astype(jnp.bfloat16)
    # NOTE: Epe2 is depthwise; block-diagonal expansion wastes a factor `groups`
    # of MXU work — harmless at dim=4, revisit for large channel counts.
    p['Epe2_bf16'] = expand_grouped_weight(p['Wpe2'], dim).astype(jnp.bfloat16)
    return p


# ------------------------------- forward ----------------------------------

def spa_spec_transformer_forward(x_in, params, *, dim, dim_head, heads):
    b, c, h, w = x_in.shape
    n = h * w
    hd = dim_head * heads
    assert c == dim and hd == 4 * dim      # implied by the module's reshapes
    d2 = 4 * dim // heads                  # == dim_head

    x_nhwc = jnp.transpose(x_in, (0, 2, 3, 1))               # (b,h,w,c) channels-last
    x_flat = x_nhwc.reshape(b * n, c).astype(jnp.bfloat16)

    # fused q/k/v + 1x1-conv q2/k2 projections: x read once, single lane-dense output
    fused = pallas_matmul(x_flat, params['W_fused'])         # (b*n, 3*hd + 8*dim) bf16
    q_inp = fused[:, 0 * hd:1 * hd]
    k_inp = fused[:, 1 * hd:2 * hd]
    v_inp = fused[:, 2 * hd:3 * hd]
    q2pre = fused[:, 3 * hd:3 * hd + 4 * dim]
    k2pre = fused[:, 3 * hd + 4 * dim:3 * hd + 8 * dim]

    # spatial branch: grouped 3x3 conv on channels-last blocks (taps formed in VMEM)
    q2sp = pallas_conv3x3_grouped(q2pre.reshape(b, h, w, 4 * dim), params['Eqc_bf16'])
    k2sp = pallas_conv3x3_grouped(k2pre.reshape(b, h, w, 4 * dim), params['Ekc_bf16'])
    q2 = jnp.transpose(q2sp.reshape(b, n, heads, d2), (0, 2, 3, 1))   # (b, heads, d2, n)
    k2 = jnp.transpose(k2sp.reshape(b, n, heads, d2), (0, 2, 3, 1))

    def to_hdn(t):   # 'b n (h d) -> b h d n'
        return jnp.transpose(t.reshape(b, n, heads, dim_head), (0, 2, 3, 1))
    q, k, v = to_hdn(q_inp), to_hdn(k_inp), to_hdn(v_inp)

    # dual attention (normalize, attn, attn2, softmax(attn*attn2), @v), heads batched
    x = pallas_dual_attention(q, k, v, q2, k2, params['rescale'], params['rescale2'])
    x = jnp.transpose(x, (0, 3, 1, 2)).reshape(b * n, hd)    # 'b h d n -> (b n)(h d)'

    out_c = pallas_matmul(x, params['Wp'], bias=params['bp'],
                          out_dtype=jnp.float32).reshape(b, h, w, dim)

    # positional-embedding branch: grouped conv (+fused exact GELU) -> depthwise conv
    vp = v_inp.reshape(b, h, w, hd)
    p1 = pallas_conv3x3_grouped(vp, params['Epe1_bf16'], apply_gelu=True)
    out_p = pallas_conv3x3_grouped(p1.reshape(b, h, w, dim), params['Epe2_bf16'],
                                   out_dtype=jnp.float32).reshape(b, h, w, dim)

    out = out_c + out_p
    return jnp.transpose(out, (0, 3, 1, 2))                  # NCHW, matches PyTorch


# ------------------------- pure-JAX reference ------------------------------

def reference_forward(x_in, params, dim, heads, dim_head):
    b, c, h, w = x_in.shape
    n = h * w
    x_nhwc = jnp.transpose(x_in, (0, 2, 3, 1))
    x_spec = x_nhwc.reshape(b, n, c)
    q_inp = x_spec @ params['Wq']
    k_inp = x_spec @ params['Wk']
    v_inp = x_spec @ params['Wv']

    def conv2d(x, wt, groups, pad):
        return lax.conv_general_dilated(
            x, wt, (1, 1), [(pad, pad), (pad, pad)],
            dimension_numbers=('NCHW', 'OIHW', 'NCHW'), feature_group_count=groups)

    Wq1 = params['Wq1'].T.reshape(4 * c, c, 1, 1)
    Wk1 = params['Wk1'].T.reshape(4 * c, c, 1, 1)
    q2 = conv2d(conv2d(x_in, Wq1, 1, 0), params['Wqc'], dim, 1).reshape(b, heads, -1, n)
    k2 = conv2d(conv2d(x_in, Wk1, 1, 0), params['Wkc'], dim, 1).reshape(b, heads, -1, n)

    def l2n(t):
        return t / jnp.maximum(jnp.linalg.norm(t, axis=-1, keepdims=True), 1e-12)

    q2, k2 = l2n(q2), l2n(k2)
    q = l2n(jnp.transpose(q_inp.reshape(b, n, heads, dim_head), (0, 2, 3, 1)))
    k = l2n(jnp.transpose(k_inp.reshape(b, n, heads, dim_head), (0, 2, 3, 1)))
    v = jnp.transpose(v_inp.reshape(b, n, heads, dim_head), (0, 2, 3, 1))
    attn = jax.nn.softmax(jnp.einsum('bhdn,bhen->bhde', q, k)
                          * params['rescale'][None, :, None, None], -1)
    attn2 = jax.nn.softmax(jnp.einsum('bhdn,bhen->bhde', q2, k2)
                           * params['rescale2'][None, :, None, None], -1)
    attn3 = jax.nn.softmax(attn * attn2, -1)
    x = jnp.einsum('bhde,bhen->bhdn', attn3, v)
    x = jnp.transpose(x, (0, 3, 1, 2)).reshape(b, n, heads * dim_head)
    out_c = (x @ params['Wp'] + params['bp']).reshape(b, h, w, c)
    vp = jnp.transpose(v_inp.reshape(b, h, w, 4 * c), (0, 3, 1, 2))
    p1 = jax.nn.gelu(conv2d(vp, params['Wpe1'], dim, 1), approximate=False)
    out_p = jnp.transpose(conv2d(p1, params['Wpe2'], dim, 1), (0, 2, 3, 1))
    return jnp.transpose(out_c + out_p, (0, 3, 1, 2))


# --------------------------------- main ------------------------------------

if __name__ == "__main__":
    dim, dim_head, heads = 4, 4, 4          # module requires dim_head*heads == 4*dim
    b, h, w = 2, 16, 16
    key = jax.random.PRNGKey(0)
    kx, kp = jax.random.split(key)
    x_in = jax.random.normal(kx, (b, dim, h, w), jnp.float32)
    params = init_params(kp, dim, dim_head, heads)

    out = spa_spec_transformer_forward(x_in, params, dim=dim, dim_head=dim_head, heads=heads)
    out = jax.block_until_ready(out)
    assert out.shape == (b, dim, h, w)

    ref = reference_forward(x_in, params, dim, heads, dim_head)
    max_err = float(jnp.max(jnp.abs(out - ref)))
    # bf16 MXU operands + EUP approx reciprocal -> slightly looser tolerance than pure f32
    assert jnp.allclose(out, ref, atol=2e-2, rtol=2e-2), max_err

    print("KERNEL_OK")
</pallas_src>

<mosaic_0001>
module attributes {stable_mosaic.version = 11 : i64} {
  func.func @_matmul_kernel(%arg0: i32, %arg1: memref<256x4xbf16, #tpu.memory_space<vmem>>, %arg2: memref<4x80xbf16, #tpu.memory_space<vmem>>, %arg3: memref<256x80xbf16, #tpu.memory_space<vmem>>) attributes {dimension_semantics = [#tpu.dimension_semantics<parallel>], iteration_bounds = array<i64: 2>, scalar_prefetch = 0 : i64, scratch_operands = 0 : i64, tpu.core_type = #tpu.core_type<tc>, window_params = [{transform_indices = @transform_0, window_bounds = array<i64: 256, 4>}, {pipeline_mode = #tpu.pipeline_mode<synchronous>, transform_indices = @transform_1, window_bounds = array<i64: 4, 80>}, {transform_indices = @transform_2, window_bounds = array<i64: 256, 80>}]} {
    %c0 = arith.constant 0 : index
    %c0_0 = arith.constant 0 : index
    %0 = vector.load %arg1[%c0, %c0_0] : memref<256x4xbf16, #tpu.memory_space<vmem>>, vector<256x4xbf16>
    %c0_1 = arith.constant 0 : index
    %c0_2 = arith.constant 0 : index
    %1 = vector.load %arg2[%c0_1, %c0_2] : memref<4x80xbf16, #tpu.memory_space<vmem>>, vector<4x80xbf16>
    %cst = arith.constant dense<0.000000e+00> : vector<256x80xf32>
    %2 = tpu.matmul %0, %1, %cst {dimension_numbers = #tpu.dot_dimension_numbers<[1], [0], [0], [1], [0, 0, 1, 1], [], []>} : vector<256x4xbf16>, vector<4x80xbf16>, vector<256x80xf32> -> vector<256x80xf32>
    %3 = arith.truncf %2 : vector<256x80xf32> to vector<256x80xbf16>
    %c0_3 = arith.constant 0 : index
    %c0_4 = arith.constant 0 : index
    %4 = vector.load %arg3[%c0_3, %c0_4] : memref<256x80xbf16, #tpu.memory_space<vmem>>, vector<256x80xbf16>
    tpu.vector_store %arg3[%c0_3, %c0_4], %3 {strides = array<i32>} : memref<256x80xbf16, #tpu.memory_space<vmem>>, vector<256x80xbf16>,
    return
  }
  func.func @transform_0(%arg0: i32) -> (i32, i32) {
    %c0_i32 = arith.constant 0 : i32
    %c0_i32_0 = arith.constant 0 : i32
    return %arg0, %c0_i32 : i32, i32
  }
  func.func @transform_1(%arg0: i32) -> (i32, i32) {
    %c0_i32 = arith.constant 0 : i32
    %c0_i32_0 = arith.constant 0 : i32
    %c0_i32_1 = arith.constant 0 : i32
    return %c0_i32, %c0_i32_0 : i32, i32
  }
  func.func @transform_2(%arg0: i32) -> (i32, i32) {
    %c0_i32 = arith.constant 0 : i32
    %c0_i32_0 = arith.constant 0 : i32
    return %arg0, %c0_i32 : i32, i32
  }
}

</mosaic_0001>

<bundles_post_ra>
// kernel: tpu_custom_call.1
= control target key start
LH: loop header
LB: loop body
LE: loop exit
PB: predicated region body
PF: predicated region fallthrough
CT: control target
= control target key end

     0   :  { %s901_s9 = smov 0   ;;  %s1028_s0 = inlined_call_operand.vmem [shape: bf16[512,4], index: 0, kind: input, shape index: {}]   ;;  %s1029_s1 = inlined_call_operand.vmem [shape: bf16[4,80], index: 1, kind: input, shape index: {}]   ;;  %s1030_s2 = inlined_call_operand.vmem [shape: bf16[512,80], index: 2, kind: output, shape index: {}]  }
   0x1 LB: > { %s692_s10 = sadd.s32 4294967295, %s884_s9   ;;  %p696_p0 = scmp.ge.s32.totalorder %s884_s9, 1  ;;  %s884_s9 = sphi %s901_s9, %s12_s9  }
   0x2   : > { %p113_p1 = scmp.lt.s32.totalorder %s884_s9, 3 }
   0x4   : > { %p114_p2 = pnand %p696_p0, %p113_p1 }
   0x5   : > { %v180_v0 = vld [vmem:[%s1029_s1] sm:$0x3] (!%p114_p2)  ;;  %vm310_vm0 = vcmask (!%p114_p2), 1041408   ;;  %s697_s13 = sshll.u32 (!%p114_p2), %s692_s10, 5  ;;  %vm261_vm1 = vcmask (!%p114_p2), 31744   ;;  %vm603_vm2 = vcmask (!%p114_p2), 650240  }
   0x6   : > { %117 = sbr.rel (%p114_p2) target bundleno = 261 (0x105), region = 28  ;;  %852 = vmatprep.subr.msk.bf16.mxu0 (!%p114_p2), %vm310_vm0, %v180_v0  ;;  %853 = vmatprep.subr.msk.bf16.mxu1 (!%p114_p2), %vm310_vm0, %v180_v0  ;;  %v312_v1 = vsel (!%p114_p2), %vm310_vm0, %v180_v0, 0  ;;  %p136_p3 = scmp.lt.s32.totalorder (!%p114_p2), %s697_s13, 63 }
   0x7   : > { %817 = vmatpush3.bf16.msra.mxu0 (!%p114_p2), %v312_v1  ;;  %851 = vmatpush3.bf16.msra.mxu1 (!%p114_p2), %v312_v1 }
   0xd   : > { %s1032_s13 = smov (!%p136_p3, %s697_s13), 63 }
   0xe   : > { %s698_s14 = sshll.u32 %s1032_s13, 2 }
   0xf   : > { %s920_s17 = scalar_lea.vmem %s1028_s0, %s698_s14  ;;  %s959_s20 = scalar_lea.vmem %s1030_s2, %s698_s14 }
  0x10   : > { %v862_v2 = vld [vmem:[%s920_s17] sm:$0xff]   ;;  %v864_v4 = vld [vmem:[%s920_s17 + $0x8] sm:$0xff]   ;;  %v866_v6 = vld [vmem:[%s920_s17 + $0x10] sm:$0xff]  }
  0x11   : > { %v863_v3 = vld [vmem:[%s920_s17 + $0x40] sm:$0xff]   ;;  %818 = vmatprep.mubr.msk.bf16.mxu0 %vm261_vm1, %v862_v2  ;;  %v865_v5 = vld [vmem:[%s920_s17 + $0x48] sm:$0xff]   ;;  %v867_v7 = vld [vmem:[%s920_s17 + $0x50] sm:$0xff]  }
  0x12   : > { %834 = vmatprep.mubr.msk.bf16.mxu1 %vm261_vm1, %v863_v3  ;;  %819 = vmatmul.mubr.msk.bf16.vlgmr.msra.gmra.mrb[0].mxu0 %vm261_vm1, %v864_v4  ;;  %v868_v8 = vld [vmem:[%s920_s17 + $0x18] sm:$0xff]   ;;  %v870_v10 = vld [vmem:[%s920_s17 + $0x20] sm:$0xff]   ;;  %v872_v12 = vld [vmem:[%s920_s17 + $0x28] sm:$0xff]  }
  0x13   : > { %835 = vmatmul.mubr.msk.bf16.vlgmr.msra.gmra.mrb[0].mxu1 %vm261_vm1, %v865_v5  ;;  %822 = vmatprep.mubr.msk.bf16.mxu0 %vm261_vm1, %v866_v6  ;;  %v869_v9 = vld [vmem:[%s920_s17 + $0x58] sm:$0xff]   ;;  %v871_v11 = vld [vmem:[%s920_s17 + $0x60] sm:$0xff]   ;;  %v873_v13 = vld [vmem:[%s920_s17 + $0x68] sm:$0xff]  }
  0x14   : > { %838 = vmatprep.mubr.msk.bf16.mxu1 %vm261_vm1, %v867_v7  ;;  %v874_v14 = vld [vmem:[%s920_s17 + $0x30] sm:$0xff]   ;;  %v876_v16 = vld [vmem:[%s920_s17 + $0x38] sm:$0xff]  }
  0x15   : > { %v875_v15 = vld [vmem:[%s920_s17 + $0x70] sm:$0xff]   ;;  %v877_v17 = vld [vmem:[%s920_s17 + $0x78] sm:$0xff]  }
  0x1a   : > { %823 = vmatmul.mubr.msk.bf16.gmra.mrb[4].mxu0 %vm261_vm1, %v868_v8 }
  0x1b   : > { %839 = vmatmul.mubr.msk.bf16.gmra.mrb[4].mxu1 %vm261_vm1, %v869_v9  ;;  %826 = vmatprep.mubr.msk.bf16.mxu0 %vm261_vm1, %v870_v10 }
  0x1c   : > { %842 = vmatprep.mubr.msk.bf16.mxu1 %vm261_vm1, %v871_v11 }
  0x22   : > { %827 = vmatmul.mubr.msk.bf16.gmra.mrb[8].mxu0 %vm261_vm1, %v872_v12 }
  0x23   : > { %843 = vmatmul.mubr.msk.bf16.gmra.mrb[8].mxu1 %vm261_vm1, %v873_v13  ;;  %830 = vmatprep.mubr.msk.bf16.mxu0 %vm261_vm1, %v874_v14 }
  0x24   : > { %846 = vmatprep.mubr.msk.bf16.mxu1 %vm261_vm1, %v875_v15 }
  0x2a   : > { %831 = vmatmul.mubr.msk.bf16.gmra.mrb[12].mxu0 %vm261_vm1, %v876_v16 }
  0x2b   : > { %847 = vmatmul.mubr.msk.bf16.gmra.mrb[12].mxu1 %vm261_vm1, %v877_v17 }
  0xe5   : > { %v820_v18 = vpop.f32.mrb[0].mxu0 }
  0xe6   : > { %v769_v19 = vpack.c.bf16 %v820_v18, %v820_v18  ;;  %v836_v20 = vpop.f32.mrb[0].mxu1  ;;  %v348_v21 = vpop.f32.mrb[1].mxu0 }
  0xe7   : > { %v785_v22 = vpack.c.bf16 %v836_v20, %v836_v20  ;;  %v767_v23 = vpack.c.bf16 %v348_v21, %v348_v21  ;;  %v412_v24 = vpop.f32.mrb[1].mxu1  ;;  %v821_v25 = vpop.f32.mrb[2].mxu0 }
  0xe8   : > { %606 = vst.msk [vmem:[%s959_s20 + $0x8] sm:$0xf] %vm603_vm2, %v769_v19  ;;  %v783_v26 = vpack.c.bf16 %v412_v24, %v412_v24  ;;  %v770_v27 = vpack.c.bf16 %v821_v25, %v821_v25  ;;  %v837_v28 = vpop.f32.mrb[2].mxu1  ;;  %v351_v29 = vpop.f32.mrb[3].mxu0 }
  0xe9   : > { %622 = vst.msk [vmem:[%s959_s20 + $0x48] sm:$0xf] %vm603_vm2, %v785_v22  ;;  %604 = vst.msk [vmem:[%s959_s20] sm:$0xf] %vm603_vm2, %v767_v23  ;;  %v786_v30 = vpack.c.bf16 %v837_v28, %v837_v28  ;;  %v768_v31 = vpack.c.bf16 %v351_v29, %v351_v29  ;;  %v415_v32 = vpop.f32.mrb[3].mxu1 }
  0xea   : > { %620 = vst.msk [vmem:[%s959_s20 + $0x40] sm:$0xf] %vm603_vm2, %v783_v26  ;;  %607 = vst.msk [vmem:[%s959_s20 + $0xc] sm:$0xf] %vm603_vm2, %v770_v27  ;;  %v784_v33 = vpack.c.bf16 %v415_v32, %v415_v32 }
  0xeb   : > { %623 = vst.msk [vmem:[%s959_s20 + $0x4c] sm:$0xf] %vm603_vm2, %v786_v30  ;;  %605 = vst.msk [vmem:[%s959_s20 + $0x4] sm:$0xf] %vm603_vm2, %v768_v31 }
  0xec   : > { %621 = vst.msk [vmem:[%s959_s20 + $0x44] sm:$0xf] %vm603_vm2, %v784_v33 }
  0xed   : > { %v824_v34 = vpop.f32.mrb[4].mxu0 }
  0xee   : > { %v773_v35 = vpack.c.bf16 %v824_v34, %v824_v34  ;;  %v840_v36 = vpop.f32.mrb[4].mxu1  ;;  %v364_v37 = vpop.f32.mrb[5].mxu0 }
  0xef   : > { %v789_v38 = vpack.c.bf16 %v840_v36, %v840_v36  ;;  %v771_v39 = vpack.c.bf16 %v364_v37, %v364_v37  ;;  %v428_v40 = vpop.f32.mrb[5].mxu1  ;;  %v825_v41 = vpop.f32.mrb[6].mxu0 }
  0xf0   : > { %610 = vst.msk [vmem:[%s959_s20 + $0x18] sm:$0xf] %vm603_vm2, %v773_v35  ;;  %v787_v42 = vpack.c.bf16 %v428_v40, %v428_v40  ;;  %v774_v43 = vpack.c.bf16 %v825_v41, %v825_v41  ;;  %v841_v44 = vpop.f32.mrb[6].mxu1  ;;  %v367_v45 = vpop.f32.mrb[7].mxu0 }
  0xf1   : > { %626 = vst.msk [vmem:[%s959_s20 + $0x58] sm:$0xf] %vm603_vm2, %v789_v38  ;;  %608 = vst.msk [vmem:[%s959_s20 + $0x10] sm:$0xf] %vm603_vm2, %v771_v39  ;;  %v790_v46 = vpack.c.bf16 %v841_v44, %v841_v44  ;;  %v772_v47 = vpack.c.bf16 %v367_v45, %v367_v45  ;;  %v431_v48 = vpop.f32.mrb[7].mxu1 }
  0xf2   : > { %624 = vst.msk [vmem:[%s959_s20 + $0x50] sm:$0xf] %vm603_vm2, %v787_v42  ;;  %611 = vst.msk [vmem:[%s959_s20 + $0x1c] sm:$0xf] %vm603_vm2, %v774_v43  ;;  %v788_v49 = vpack.c.bf16 %v431_v48, %v431_v48 }
  0xf3   : > { %627 = vst.msk [vmem:[%s959_s20 + $0x5c] sm:$0xf] %vm603_vm2, %v790_v46  ;;  %609 = vst.msk [vmem:[%s959_s20 + $0x14] sm:$0xf] %vm603_vm2, %v772_v47 }
  0xf4   : > { %625 = vst.msk [vmem:[%s959_s20 + $0x54] sm:$0xf] %vm603_vm2, %v788_v49 }
  0xf5   : > { %v828_v50 = vpop.f32.mrb[8].mxu0 }
  0xf6   : > { %v777_v51 = vpack.c.bf16 %v828_v50, %v828_v50  ;;  %v844_v52 = vpop.f32.mrb[8].mxu1  ;;  %v380_v53 = vpop.f32.mrb[9].mxu0 }
  0xf7   : > { %v793_v54 = vpack.c.bf16 %v844_v52, %v844_v52  ;;  %v775_v55 = vpack.c.bf16 %v380_v53, %v380_v53  ;;  %v444_v56 = vpop.f32.mrb[9].mxu1  ;;  %v829_v57 = vpop.f32.mrb[10].mxu0 }
  0xf8   : > { %614 = vst.msk [vmem:[%s959_s20 + $0x28] sm:$0xf] %vm603_vm2, %v777_v51  ;;  %v791_v58 = vpack.c.bf16 %v444_v56, %v444_v56  ;;  %v778_v59 = vpack.c.bf16 %v829_v57, %v829_v57  ;;  %v845_v60 = vpop.f32.mrb[10].mxu1  ;;  %v383_v61 = vpop.f32.mrb[11].mxu0 }
  0xf9   : > { %630 = vst.msk [vmem:[%s959_s20 + $0x68] sm:$0xf] %vm603_vm2, %v793_v54  ;;  %612 = vst.msk [vmem:[%s959_s20 + $0x20] sm:$0xf] %vm603_vm2, %v775_v55  ;;  %v794_v62 = vpack.c.bf16 %v845_v60, %v845_v60  ;;  %v776_v63 = vpack.c.bf16 %v383_v61, %v383_v61  ;;  %v447_v0 = vpop.f32.mrb[11].mxu1 }
  0xfa   : > { %628 = vst.msk [vmem:[%s959_s20 + $0x60] sm:$0xf] %vm603_vm2, %v791_v58  ;;  %615 = vst.msk [vmem:[%s959_s20 + $0x2c] sm:$0xf] %vm603_vm2, %v778_v59  ;;  %v792_v1 = vpack.c.bf16 %v447_v0, %v447_v0 }
  0xfb   : > { %631 = vst.msk [vmem:[%s959_s20 + $0x6c] sm:$0xf] %vm603_vm2, %v794_v62  ;;  %613 = vst.msk [vmem:[%s959_s20 + $0x24] sm:$0xf] %vm603_vm2, %v776_v63 }
  0xfc   : > { %629 = vst.msk [vmem:[%s959_s20 + $0x64] sm:$0xf] %vm603_vm2, %v792_v1 }
  0xfd   : > { %v832_v2 = vpop.f32.mrb[12].mxu0 }
  0xfe   : > { %v781_v3 = vpack.c.bf16 %v832_v2, %v832_v2  ;;  %v848_v4 = vpop.f32.mrb[12].mxu1  ;;  %v396_v5 = vpop.f32.mrb[13].mxu0 }
  0xff   : > { %v797_v6 = vpack.c.bf16 %v848_v4, %v848_v4  ;;  %v779_v7 = vpack.c.bf16 %v396_v5, %v396_v5  ;;  %v460_v8 = vpop.f32.mrb[13].mxu1  ;;  %v833_v9 = vpop.f32.mrb[14].mxu0 }
 0x100   : > { %618 = vst.msk [vmem:[%s959_s20 + $0x38] sm:$0xf] %vm603_vm2, %v781_v3  ;;  %v795_v10 = vpack.c.bf16 %v460_v8, %v460_v8  ;;  %v782_v11 = vpack.c.bf16 %v833_v9, %v833_v9  ;;  %v849_v12 = vpop.f32.mrb[14].mxu1  ;;  %v399_v13 = vpop.f32.mrb[15].mxu0 }
 0x101   : > { %634 = vst.msk [vmem:[%s959_s20 + $0x78] sm:$0xf] %vm603_vm2, %v797_v6  ;;  %616 = vst.msk [vmem:[%s959_s20 + $0x30] sm:$0xf] %vm603_vm2, %v779_v7  ;;  %v798_v14 = vpack.c.bf16 %v849_v12, %v849_v12  ;;  %v780_v15 = vpack.c.bf16 %v399_v13, %v399_v13  ;;  %v463_v16 = vpop.f32.mrb[15].mxu1 }
 0x102   : > { %632 = vst.msk [vmem:[%s959_s20 + $0x70] sm:$0xf] %vm603_vm2, %v795_v10  ;;  %619 = vst.msk [vmem:[%s959_s20 + $0x3c] sm:$0xf] %vm603_vm2, %v782_v11  ;;  %v796_v17 = vpack.c.bf16 %v463_v16, %v463_v16 }
 0x103   : > { %635 = vst.msk [vmem:[%s959_s20 + $0x7c] sm:$0xf] %vm603_vm2, %v798_v14  ;;  %617 = vst.msk [vmem:[%s959_s20 + $0x34] sm:$0xf] %vm603_vm2, %v780_v15 }
 0x104   : > { %633 = vst.msk [vmem:[%s959_s20 + $0x74] sm:$0xf] %vm603_vm2, %v796_v17 }
 0x105 PF: > { %s12_s9 = sadd.s32 1, %s884_s9  }
 0x106   : > { %p9_p4 = scmp.ge.s32.totalorder %s12_s9, 4  }
 0x108   :  { %11 = sbr.rel (!%p9_p4) target bundleno = 1 (0x1), region = 58 }

</bundles_post_ra>
